<compile_context>
chip_gen: v7x
topology: tpu7x:2x2x1
jax: 0.10.0
libtpu: 0.0.40
codegen_flags: <defaults>
</compile_context>

<pallas_src>
import jax
import jax.numpy as jnp
import numpy as np
from jax import lax
from jax.experimental import pallas as pl
from jax.experimental.pallas import tpu as pltpu

B = 2
C_IN = 4
C_OUT = 8
K = 3
STRIDE = 2
RATIO = 4
C_HID = C_OUT // RATIO
T = 16
PAD = (K - 1) // 2
T_OUT = (T + 2 * PAD - K) // STRIDE + 1       # strided conv1 / block output length
EPS = 1e-5

W_IN = B * C_IN      # fused lane width of the input path  (lane = b*C_IN + c)
W_OUT = B * C_OUT    # fused lane width of the output path (lane = b*C_OUT + c)
W_HID = B * C_HID

# Constant-slab row layout (all sections start at multiples of 8 sublanes).
ROW_BN1_S = 0        # bn1 scale  (cols 0:W_IN)
ROW_BN1_B = 1        # bn1 shift  (cols 0:W_IN)
ROW_BN2_S = 2        # bn2 scale  (cols 0:W_OUT)
ROW_BN2_B = 3        # bn2 shift  (cols 0:W_OUT)
ROW_FC1_B = 4        # SE fc1 bias (cols 0:W_HID, rest zero)
ROW_FC2_B = 5        # SE fc2 bias (cols 0:W_OUT)
W1_OFF = 8                       # conv1 weights, vstacked over taps: (K*W_IN, W_OUT)
W2_OFF = W1_OFF + K * W_IN       # conv2 weights, vstacked over taps: (K*W_OUT, W_OUT)
FC1_OFF = W2_OFF + K * W_OUT     # SE fc1 block-diag weight (W_OUT, W_OUT), cols>=W_HID zero
FC2_OFF = FC1_OFF + W_OUT        # SE fc2 block-diag weight (W_OUT, W_OUT), rows>=W_HID zero
WID_OFF = FC2_OFF + W_OUT        # identity 1x1 conv weight * (1/STRIDE): (W_IN, W_OUT)
R_TOTAL = WID_OFF + W_IN         # 120 rows total

# TODO(synk): training-mode semantics (batch-stat BatchNorm, dropout RNG) and
# the leadwise=True (Conv2d / per-lead) branch are not implemented; this kernel
# reproduces the inference forward of the 1-D (leadwise=False) configuration.
# TODO(synk): the identity AvgPool path assumes T % STRIDE == 0 (no ceil_mode
# partial window), which holds for the spec shapes used here.


def se_wrn_block_kernel(x_ref, c_ref, o_ref):
    # layout: (time, batch*channel); single invocation, no grid, no scratch.
    bn1_s = c_ref[ROW_BN1_S:ROW_BN1_S + 1, 0:W_IN]
    bn1_b = c_ref[ROW_BN1_B:ROW_BN1_B + 1, 0:W_IN]
    bn2_s = c_ref[ROW_BN2_S:ROW_BN2_S + 1, :]
    bn2_b = c_ref[ROW_BN2_B:ROW_BN2_B + 1, :]
    fc1_b = c_ref[ROW_FC1_B:ROW_FC1_B + 1, :]
    fc2_b = c_ref[ROW_FC2_B:ROW_FC2_B + 1, :]

    # Stride-2 deinterleave of the input via strided loads; each row of x is
    # read exactly once and both phases are reused by the identity path.
    x_even = x_ref[pl.ds(0, T_OUT, stride=STRIDE), :]        # x[2j]   (T_OUT, W_IN)
    x_odd = x_ref[pl.ds(1, T_OUT, stride=STRIDE), :]         # x[2j+1] (T_OUT, W_IN)

    # bn1 (inference BN folded to scale/shift) + relu on both phases.
    h_even = jnp.maximum(x_even * bn1_s + bn1_b, 0.0)        # h[2j]
    h_odd = jnp.maximum(x_odd * bn1_s + bn1_b, 0.0)          # h[2j+1]
    zrow_in = jnp.zeros((1, W_IN), jnp.float32)
    h_prev = jnp.concatenate([zrow_in, h_odd[:T_OUT - 1, :]], axis=0)   # h[2j-1], h[-1]=0

    # conv1 (stride=STRIDE, same padding): all K taps fused into ONE matmul.
    lhs1 = jnp.concatenate([h_prev, h_even, h_odd], axis=1)             # (T_OUT, K*W_IN)
    y1 = jnp.dot(lhs1, c_ref[W1_OFF:W1_OFF + K * W_IN, :],
                 preferred_element_type=jnp.float32)                    # (T_OUT, W_OUT)

    # bn2 + relu   (dropout is identity at inference time)
    g = jnp.maximum(y1 * bn2_s + bn2_b, 0.0)
    zrow_out = jnp.zeros((1, W_OUT), jnp.float32)
    g_prev = jnp.concatenate([zrow_out, g[:T_OUT - 1, :]], axis=0)      # g[j-1], g[-1]=0
    g_next = jnp.concatenate([g[1:, :], zrow_out], axis=0)              # g[j+1], g[T_OUT]=0

    # conv2 (stride 1, same padding): single fused matmul.
    lhs2 = jnp.concatenate([g_prev, g, g_next], axis=1)                 # (T_OUT, K*W_OUT)
    y2 = jnp.dot(lhs2, c_ref[W2_OFF:W2_OFF + K * W_OUT, :],
                 preferred_element_type=jnp.float32)                    # (T_OUT, W_OUT)

    # squeeze-excite: GAP over time -> fc1 -> relu -> fc2 -> sigmoid -> scale.
    # Block-diagonal weights and zero-padded hidden lanes keep the padded
    # lanes exactly zero through dot + bias + relu.
    se = jnp.mean(y2, axis=0, keepdims=True)                            # (1, W_OUT)
    se = jnp.maximum(
        jnp.dot(se, c_ref[FC1_OFF:FC1_OFF + W_OUT, :],
                preferred_element_type=jnp.float32) + fc1_b, 0.0)
    se = jax.nn.sigmoid(
        jnp.dot(se, c_ref[FC2_OFF:FC2_OFF + W_OUT, :],
                preferred_element_type=jnp.float32) + fc2_b)

    # identity path: AvgPool1d(k=s, s=s) reuses the loaded phases; the 1/STRIDE
    # factor is folded into the 1x1 conv weights in the slab.
    idp = jnp.dot(x_even + x_odd, c_ref[WID_OFF:WID_OFF + W_IN, :],
                  preferred_element_type=jnp.float32)                   # (T_OUT, W_OUT)

    o_ref[...] = y2 * se + idp


def pack_constants(params):
    """One-time packing of all block parameters into a single (R_TOTAL, W_OUT) slab."""
    s1 = params["bn1_g"] / jnp.sqrt(params["bn1_v"] + EPS)
    b1 = params["bn1_b"] - params["bn1_m"] * s1
    s2 = params["bn2_g"] / jnp.sqrt(params["bn2_v"] + EPS)
    b2 = params["bn2_b"] - params["bn2_m"] * s2

    eye_b = jnp.eye(B, dtype=jnp.float32)
    w1_t = jnp.transpose(params["w1"], (2, 1, 0))             # (K, C_IN, C_OUT)
    w2_t = jnp.transpose(params["w2"], (2, 1, 0))             # (K, C_OUT, C_OUT)
    # block-diagonal kron(I_B, w) per tap, vstacked along the contraction axis
    w1_stack = jnp.concatenate([jnp.kron(eye_b, w1_t[k]) for k in range(K)],
                               axis=0)                        # (K*W_IN, W_OUT)
    w2_stack = jnp.concatenate([jnp.kron(eye_b, w2_t[k]) for k in range(K)],
                               axis=0)                        # (K*W_OUT, W_OUT)
    fc1_bd = jnp.kron(eye_b, params["fc1_w"].T)               # (W_OUT, W_HID)
    fc2_bd = jnp.kron(eye_b, params["fc2_w"].T)               # (W_HID, W_OUT)
    wid_bd = jnp.kron(eye_b, params["wid"][:, :, 0].T) * (1.0 / STRIDE)  # (W_IN, W_OUT)

    c = jnp.zeros((R_TOTAL, W_OUT), jnp.float32)
    c = c.at[ROW_BN1_S, 0:W_IN].set(jnp.tile(s1, B))
    c = c.at[ROW_BN1_B, 0:W_IN].set(jnp.tile(b1, B))
    c = c.at[ROW_BN2_S, :].set(jnp.tile(s2, B))
    c = c.at[ROW_BN2_B, :].set(jnp.tile(b2, B))
    c = c.at[ROW_FC1_B, 0:W_HID].set(jnp.tile(params["fc1_b"], B))
    c = c.at[ROW_FC2_B, :].set(jnp.tile(params["fc2_b"], B))
    c = c.at[W1_OFF:W1_OFF + K * W_IN, :].set(w1_stack)
    c = c.at[W2_OFF:W2_OFF + K * W_OUT, :].set(w2_stack)
    c = c.at[FC1_OFF:FC1_OFF + W_OUT, 0:W_HID].set(fc1_bd)
    c = c.at[FC2_OFF:FC2_OFF + W_HID, :].set(fc2_bd)
    c = c.at[WID_OFF:WID_OFF + W_IN, :].set(wid_bd)
    return c


@jax.jit
def se_wrn_block(x_nct, const_slab):
    # x_nct: (B, C_IN, T) in PyTorch NCL layout.  Kernel layout is
    # (time, batch*channel) so the whole batch is one matmul LHS.
    x_tw = jnp.transpose(x_nct, (2, 0, 1)).reshape(T, W_IN).astype(jnp.float32)
    out = pl.pallas_call(
        se_wrn_block_kernel,
        out_shape=jax.ShapeDtypeStruct((T_OUT, W_OUT), jnp.float32),
        # No grid: single invocation, whole (tiny) arrays resident in VMEM,
        # no double-buffering / pipeline bookkeeping.
        in_specs=[pl.BlockSpec(memory_space=pltpu.MemorySpace.VMEM),
                  pl.BlockSpec(memory_space=pltpu.MemorySpace.VMEM)],
        out_specs=pl.BlockSpec(memory_space=pltpu.MemorySpace.VMEM),
    )(x_tw, const_slab)
    # (T_OUT, B*C_OUT) -> (B, C_OUT, T_OUT)
    return jnp.transpose(out.reshape(T_OUT, B, C_OUT), (1, 2, 0))


def reference(x_nct, params):
    """Pure-JAX reference matching the PyTorch forward (inference mode)."""
    s1 = params["bn1_g"] / jnp.sqrt(params["bn1_v"] + EPS)
    b1 = params["bn1_b"] - params["bn1_m"] * s1
    h = jax.nn.relu(x_nct * s1[None, :, None] + b1[None, :, None])
    y1 = lax.conv_general_dilated(h, params["w1"], (STRIDE,), [(PAD, PAD)],
                                  dimension_numbers=("NCH", "OIH", "NCH"))
    s2 = params["bn2_g"] / jnp.sqrt(params["bn2_v"] + EPS)
    b2 = params["bn2_b"] - params["bn2_m"] * s2
    g = jax.nn.relu(y1 * s2[None, :, None] + b2[None, :, None])
    y2 = lax.conv_general_dilated(g, params["w2"], (1,), [(PAD, PAD)],
                                  dimension_numbers=("NCH", "OIH", "NCH"))
    se = y2.mean(axis=-1)                                     # (B, C_OUT)
    se = jax.nn.relu(se @ params["fc1_w"].T + params["fc1_b"])
    se = jax.nn.sigmoid(se @ params["fc2_w"].T + params["fc2_b"])
    y2 = y2 * se[:, :, None]
    idp = x_nct.reshape(B, C_IN, T // STRIDE, STRIDE).mean(-1)
    idp = jnp.einsum("oc,bct->bot", params["wid"][:, :, 0], idp)
    return y2 + idp


if __name__ == "__main__":
    key = jax.random.PRNGKey(0)
    keys = jax.random.split(key, 16)
    params = {
        "bn1_g": 1.0 + 0.1 * jax.random.normal(keys[0], (C_IN,)),
        "bn1_b": 0.1 * jax.random.normal(keys[1], (C_IN,)),
        "bn1_m": 0.1 * jax.random.normal(keys[2], (C_IN,)),
        "bn1_v": 0.5 + jax.random.uniform(keys[3], (C_IN,)),
        "w1": 0.2 * jax.random.normal(keys[4], (C_OUT, C_IN, K)),
        "bn2_g": 1.0 + 0.1 * jax.random.normal(keys[5], (C_OUT,)),
        "bn2_b": 0.1 * jax.random.normal(keys[6], (C_OUT,)),
        "bn2_m": 0.1 * jax.random.normal(keys[7], (C_OUT,)),
        "bn2_v": 0.5 + jax.random.uniform(keys[8], (C_OUT,)),
        "w2": 0.2 * jax.random.normal(keys[9], (C_OUT, C_OUT, K)),
        "fc1_w": 0.3 * jax.random.normal(keys[10], (C_HID, C_OUT)),
        "fc1_b": 0.1 * jax.random.normal(keys[11], (C_HID,)),
        "fc2_w": 0.3 * jax.random.normal(keys[12], (C_OUT, C_HID)),
        "fc2_b": 0.1 * jax.random.normal(keys[13], (C_OUT,)),
        "wid": 0.2 * jax.random.normal(keys[14], (C_OUT, C_IN, 1)),
    }
    params = {k: v.astype(jnp.float32) for k, v in params.items()}
    x = jax.random.normal(keys[15], (B, C_IN, T), dtype=jnp.float32)

    # One-time constant packing (hoisted out of the per-call path).
    const_slab = jax.block_until_ready(pack_constants(params))

    out = jax.block_until_ready(se_wrn_block(x, const_slab))
    ref = jax.block_until_ready(reference(x, params))
    np.testing.assert_allclose(np.asarray(out), np.asarray(ref),
                               rtol=1e-4, atol=1e-4)
    print("KERNEL_OK")
</pallas_src>

<mosaic_0001>
module attributes {stable_mosaic.version = 11 : i64} {
  func.func @se_wrn_block_kernel(%arg0: memref<16x8xf32, #tpu.memory_space<vmem>>, %arg1: memref<120x16xf32, #tpu.memory_space<vmem>>, %arg2: memref<8x16xf32, #tpu.memory_space<vmem>>) attributes {dimension_semantics = [], scalar_prefetch = 0 : i64, scratch_operands = 0 : i64, tpu.core_type = #tpu.core_type<tc>} {
    %c0 = arith.constant 0 : index
    %c0_0 = arith.constant 0 : index
    %0 = vector.load %arg1[%c0, %c0_0] : memref<120x16xf32, #tpu.memory_space<vmem>>, vector<1x8xf32>
    %c1 = arith.constant 1 : index
    %c0_1 = arith.constant 0 : index
    %1 = vector.load %arg1[%c1, %c0_1] : memref<120x16xf32, #tpu.memory_space<vmem>>, vector<1x8xf32>
    %c2 = arith.constant 2 : index
    %c0_2 = arith.constant 0 : index
    %2 = vector.load %arg1[%c2, %c0_2] : memref<120x16xf32, #tpu.memory_space<vmem>>, vector<1x16xf32>
    %c3 = arith.constant 3 : index
    %c0_3 = arith.constant 0 : index
    %3 = vector.load %arg1[%c3, %c0_3] : memref<120x16xf32, #tpu.memory_space<vmem>>, vector<1x16xf32>
    %c4 = arith.constant 4 : index
    %c0_4 = arith.constant 0 : index
    %4 = vector.load %arg1[%c4, %c0_4] : memref<120x16xf32, #tpu.memory_space<vmem>>, vector<1x16xf32>
    %c5 = arith.constant 5 : index
    %c0_5 = arith.constant 0 : index
    %5 = vector.load %arg1[%c5, %c0_5] : memref<120x16xf32, #tpu.memory_space<vmem>>, vector<1x16xf32>
    %c0_6 = arith.constant 0 : index
    %c0_7 = arith.constant 0 : index
    %6 = tpu.strided_load %arg0[%c0_6, %c0_7] {strides = array<i32: 2, 1>} : memref<16x8xf32, #tpu.memory_space<vmem>>, vector<8x8xf32>
    %c1_8 = arith.constant 1 : index
    %c0_9 = arith.constant 0 : index
    %7 = tpu.strided_load %arg0[%c1_8, %c0_9] {strides = array<i32: 2, 1>} : memref<16x8xf32, #tpu.memory_space<vmem>>, vector<8x8xf32>
    %8 = vector.broadcast %0 : vector<1x8xf32> to vector<8x8xf32>
    %9 = arith.mulf %6, %8 : vector<8x8xf32>
    %10 = vector.broadcast %1 : vector<1x8xf32> to vector<8x8xf32>
    %11 = arith.addf %9, %10 : vector<8x8xf32>
    %cst = arith.constant 0.000000e+00 : f32
    %12 = vector.broadcast %cst : f32 to vector<8x8xf32>
    %13 = arith.maximumf %11, %12 : vector<8x8xf32>
    %14 = vector.broadcast %0 : vector<1x8xf32> to vector<8x8xf32>
    %15 = arith.mulf %7, %14 : vector<8x8xf32>
    %16 = vector.broadcast %1 : vector<1x8xf32> to vector<8x8xf32>
    %17 = arith.addf %15, %16 : vector<8x8xf32>
    %cst_10 = arith.constant 0.000000e+00 : f32
    %18 = vector.broadcast %cst_10 : f32 to vector<8x8xf32>
    %19 = arith.maximumf %17, %18 : vector<8x8xf32>
    %cst_11 = arith.constant 0.000000e+00 : f32
    %20 = vector.broadcast %cst_11 : f32 to vector<1x8xf32>
    %21 = vector.extract_strided_slice %19 {offsets = [0, 0], sizes = [7, 8], strides = [1, 1]} : vector<8x8xf32> to vector<7x8xf32>
    %22 = tpu.concatenate %20, %21 in 0 : vector<1x8xf32>, vector<7x8xf32> -> vector<8x8xf32>
    %23 = tpu.concatenate %22, %13, %19 in 1 : vector<8x8xf32>, vector<8x8xf32>, vector<8x8xf32> -> vector<8x24xf32>
    %c8 = arith.constant 8 : index
    %c0_12 = arith.constant 0 : index
    %24 = vector.load %arg1[%c8, %c0_12] : memref<120x16xf32, #tpu.memory_space<vmem>>, vector<24x16xf32>
    %cst_13 = arith.constant dense<0.000000e+00> : vector<8x16xf32>
    %25 = tpu.matmul %23, %24, %cst_13 {dimension_numbers = #tpu.dot_dimension_numbers<[1], [0], [0], [1], [0, 0, 1, 1], [], []>} : vector<8x24xf32>, vector<24x16xf32>, vector<8x16xf32> -> vector<8x16xf32>
    %26 = vector.broadcast %2 : vector<1x16xf32> to vector<8x16xf32>
    %27 = arith.mulf %25, %26 : vector<8x16xf32>
    %28 = vector.broadcast %3 : vector<1x16xf32> to vector<8x16xf32>
    %29 = arith.addf %27, %28 : vector<8x16xf32>
    %cst_14 = arith.constant 0.000000e+00 : f32
    %30 = vector.broadcast %cst_14 : f32 to vector<8x16xf32>
    %31 = arith.maximumf %29, %30 : vector<8x16xf32>
    %cst_15 = arith.constant 0.000000e+00 : f32
    %32 = vector.broadcast %cst_15 : f32 to vector<1x16xf32>
    %33 = vector.extract_strided_slice %31 {offsets = [0, 0], sizes = [7, 16], strides = [1, 1]} : vector<8x16xf32> to vector<7x16xf32>
    %34 = tpu.concatenate %32, %33 in 0 : vector<1x16xf32>, vector<7x16xf32> -> vector<8x16xf32>
    %35 = vector.extract_strided_slice %31 {offsets = [1, 0], sizes = [7, 16], strides = [1, 1]} : vector<8x16xf32> to vector<7x16xf32>
    %36 = tpu.concatenate %35, %32 in 0 : vector<7x16xf32>, vector<1x16xf32> -> vector<8x16xf32>
    %37 = tpu.concatenate %34, %31, %36 in 1 : vector<8x16xf32>, vector<8x16xf32>, vector<8x16xf32> -> vector<8x48xf32>
    %c32 = arith.constant 32 : index
    %c0_16 = arith.constant 0 : index
    %38 = vector.load %arg1[%c32, %c0_16] : memref<120x16xf32, #tpu.memory_space<vmem>>, vector<48x16xf32>
    %cst_17 = arith.constant dense<0.000000e+00> : vector<8x16xf32>
    %39 = tpu.matmul %37, %38, %cst_17 {dimension_numbers = #tpu.dot_dimension_numbers<[1], [0], [0], [1], [0, 0, 1, 1], [], []>} : vector<8x48xf32>, vector<48x16xf32>, vector<8x16xf32> -> vector<8x16xf32>
    %cst_18 = arith.constant dense<0.000000e+00> : vector<16xf32>
    %40 = vector.multi_reduction <add>, %39, %cst_18 [0] : vector<8x16xf32> to vector<16xf32>
    %41 = vector.shape_cast %40 : vector<16xf32> to vector<1x16xf32>
    %cst_19 = arith.constant 8.000000e+00 : f32
    %42 = vector.broadcast %cst_19 : f32 to vector<1x16xf32>
    %43 = arith.divf %41, %42 : vector<1x16xf32>
    %c80 = arith.constant 80 : index
    %c0_20 = arith.constant 0 : index
    %44 = vector.load %arg1[%c80, %c0_20] : memref<120x16xf32, #tpu.memory_space<vmem>>, vector<16x16xf32>
    %cst_21 = arith.constant dense<0.000000e+00> : vector<1x16xf32>
    %45 = tpu.matmul %43, %44, %cst_21 {dimension_numbers = #tpu.dot_dimension_numbers<[1], [0], [0], [1], [0, 0, 1, 1], [], []>} : vector<1x16xf32>, vector<16x16xf32>, vector<1x16xf32> -> vector<1x16xf32>
    %46 = arith.addf %45, %4 : vector<1x16xf32>
    %cst_22 = arith.constant 0.000000e+00 : f32
    %47 = vector.broadcast %cst_22 : f32 to vector<1x16xf32>
    %48 = arith.maximumf %46, %47 : vector<1x16xf32>
    %c96 = arith.constant 96 : index
    %c0_23 = arith.constant 0 : index
    %49 = vector.load %arg1[%c96, %c0_23] : memref<120x16xf32, #tpu.memory_space<vmem>>, vector<16x16xf32>
    %cst_24 = arith.constant dense<0.000000e+00> : vector<1x16xf32>
    %50 = tpu.matmul %48, %49, %cst_24 {dimension_numbers = #tpu.dot_dimension_numbers<[1], [0], [0], [1], [0, 0, 1, 1], [], []>} : vector<1x16xf32>, vector<16x16xf32>, vector<1x16xf32> -> vector<1x16xf32>
    %51 = arith.addf %50, %5 : vector<1x16xf32>
    %52 = arith.negf %51 : vector<1x16xf32>
    %53 = math.exp %52 : vector<1x16xf32>
    %cst_25 = arith.constant 1.000000e+00 : f32
    %54 = vector.broadcast %cst_25 : f32 to vector<1x16xf32>
    %55 = arith.addf %54, %53 : vector<1x16xf32>
    %56 = arith.divf %54, %55 : vector<1x16xf32>
    %57 = arith.addf %6, %7 : vector<8x8xf32>
    %c112 = arith.constant 112 : index
    %c0_26 = arith.constant 0 : index
    %58 = vector.load %arg1[%c112, %c0_26] : memref<120x16xf32, #tpu.memory_space<vmem>>, vector<8x16xf32>
    %cst_27 = arith.constant dense<0.000000e+00> : vector<8x16xf32>
    %59 = tpu.matmul %57, %58, %cst_27 {dimension_numbers = #tpu.dot_dimension_numbers<[1], [0], [0], [1], [0, 0, 1, 1], [], []>} : vector<8x8xf32>, vector<8x16xf32>, vector<8x16xf32> -> vector<8x16xf32>
    %60 = vector.broadcast %56 : vector<1x16xf32> to vector<8x16xf32>
    %61 = arith.mulf %39, %60 : vector<8x16xf32>
    %62 = arith.addf %61, %59 : vector<8x16xf32>
    %c0_28 = arith.constant 0 : index
    %c0_29 = arith.constant 0 : index
    %63 = vector.load %arg2[%c0_28, %c0_29] : memref<8x16xf32, #tpu.memory_space<vmem>>, vector<8x16xf32>
    tpu.vector_store %arg2[%c0_28, %c0_29], %62 {strides = array<i32>} : memref<8x16xf32, #tpu.memory_space<vmem>>, vector<8x16xf32>,
    return
  }
}

</mosaic_0001>

<bundles_post_ra>
// kernel: se_wrn_block.1
= control target key start
LH: loop header
LB: loop body
LE: loop exit
PB: predicated region body
PF: predicated region fallthrough
CT: control target
= control target key end

     0   :  { %v589_v3 = vmov 0.0|0.0   ;;  %vm590_vm0 = vmmov 0   ;;  %v591_v11 = vmov 0.0   ;;  %s592_s22 = smov 8   ;;  %s593_s23 = smov 16   ;;  %vm37_vm1 = vcmask 1040384   ;;  %s712_s0 = inlined_call_operand.vmem [shape: f32[16,8], index: 0, kind: input, shape index: {}]   ;;  %s713_s1 = inlined_call_operand.vmem [shape: f32[120,16], index: 1, kind: input, shape index: {}]   ;;  %s714_s2 = inlined_call_operand.vmem [shape: f32[8,16], index: 2, kind: output, shape index: {}]  }
   0x1   :  { %v489_v0 = vld [vmem:[%s713_s1] ss:$0 sm:$0xff]  ;;  %v490_v1 = vld [vmem:[%s713_s1 + $0x1] ss:$0 sm:$0xff]  ;;  %561 = vmatprep.subr.bf16.mxu0 %v589_v3  ;;  %564 = vmatprep.subr.bf16.mxu1 %v589_v3  ;;  %v50_v6 = vld [vmem:[%s713_s1 + $0x8] sm:$0xff]  ;;  %vm46_vm2 = vcmask 64512  }
   0x2   :  { %v17_v2 = vld [vmem:[%s712_s0] ss:$2 sm:$0xff]  ;;  %v488_v4 = vld [vmem:[%s712_s0 + $0x1] ss:$2 sm:$0xff]  ;;  %v51_v7 = vld [vmem:[%s713_s1 + $0x10] sm:$0xff]  ;;  %524 = vmatprep.mubr.msk.f32.mxu0 %vm590_vm0, %v591_v11  ;;  %539 = vmatprep.mubr.msk.f32.mxu1 %vm590_vm0, %v591_v11  ;;  %vm48_vm3 = vcmask 130048  }
   0x3   :  { %v24_v5 = vmul.f32 %v489_v0, %v17_v2  ;;  %v31_v8 = vmul.f32 %v489_v0, %v488_v4  ;;  %v630_v9 = vadd.f32 %v488_v4, %v17_v2  ;;  %v562_v10 = vpack.c.bf16 %v51_v7, %v50_v6  ;;  %v52_v15 = vld [vmem:[%s713_s1 + $0x18] sm:$0xff]  ;;  %v156_v23 = vld [vmem:[%s713_s1 + $0x20] sm:$0xff]  ;;  %v157_v24 = vld [vmem:[%s713_s1 + $0x28] sm:$0xff]  ;;  %s594_s12 = smov 32  }
   0x4   :  { %vm53_vm4 = vcmask 195584   ;;  %v158_v25 = vld [vmem:[%s713_s1 + $0x30] sm:$0xff]  ;;  %v565_v26 = vpack.c.bf16 %v157_v24, %v156_v23  ;;  %v159_v27 = vld [vmem:[%s713_s1 + $0x38] sm:$0xff]  ;;  %v160_v29 = vld [vmem:[%s713_s1 + $0x40] sm:$0xff]  ;;  %vm144_vm5 = vcmask 1046528   ;;  %vm154_vm6 = vcmask 261120  }
   0x5   :  { %v29_v12 = vadd.f32 %v490_v1, %v24_v5  ;;  %v32_v13 = vadd.f32 %v490_v1, %v31_v8  ;;  %563 = vmatpush3.bf16.msra.mxu0 %v562_v10  ;;  %v568_v28 = vpack.c.bf16 %v159_v27, %v158_v25  ;;  %v161_v30 = vld [vmem:[%s713_s1 + $0x48] sm:$0xff]  ;;  %v492_v32 = vld [vmem:[%s713_s1 + $0x2] ss:$0 sm:$0xff]  ;;  %v493_v33 = vld [vmem:[%s713_s1 + $0x3] ss:$0 sm:$0xff]  ;;  %vm162_vm7 = vcmask 392192  }
   0x6   :  { %522 = vmatprep.subr.mxu0 %v591_v11  ;;  %566 = vmatpush3.bf16.msra.mxu1 %v565_v26  ;;  %v571_v31 = vpack.c.bf16 %v161_v30, %v160_v29  ;;  %v245_v47 = vld [vmem:[%s713_s1 + $0x50] sm:$0xff]  ;;  %v246_v48 = vld [vmem:[%s713_s1 + $0x58] sm:$0xff]  ;;  %v321_v60 = vld [vmem:[%s713_s1 + $0x60] sm:$0xff] }
   0x7   :  { %v30_v14 = vmax.f32 %v29_v12, 0.0  ;;  %v33_v16 = vmax.f32 %v32_v13, 0.0  ;;  %567 = vmatprep.subr.bf16.mxu1 %v589_v3  ;;  %v574_v49 = vpack.c.bf16 %v246_v48, %v245_v47  ;;  %v322_v61 = vld [vmem:[%s713_s1 + $0x68] sm:$0xff]  ;;  %v403_v63 = vld [vmem:[%s713_s1 + $0x70] sm:$0xff]  ;;  %v15_v0 = vld [vmem:[%s713_s1 + $0x4] sm:$0x1] }
   0x8   :  { %v577_v62 = vpack.c.bf16 %v322_v61, %v321_v60  ;;  %v16_v7 = vld [vmem:[%s713_s1 + $0x5] sm:$0x1] }
   0x9   :  { %40 = vrot.lane.b32.xlu0 %v30_v14, %s592_s22  ;;  %523 = vmatpush3.msra.mxu0 %v52_v15  ;;  %v35_v17 = vrot.slane %v33_v16, 7  ;;  %v477_v14 = vlaneseq }
   0xa   :  { %573 = vmatprep.subr.bf16.mxu0 %v589_v3  ;;  %569 = vmatpush3.bf16.msra.mxu1 %v568_v28 }
   0xb   :  { %v38_v19 = vsel %vm37_vm1, 0.0, %v35_v17  ;;  %570 = vmatprep.subr.bf16.mxu1 %v589_v3  ;;  %v478_v15 = vshrl.u32 %v477_v14, 7 }
   0xd   :  { %43 = vrot.lane.b32.xlu0 %v33_v16, %s593_s23  ;;  %v479_v16 = vsub.s32 0, %v478_v15 }
   0xe   :  { %572 = vmatpush3.bf16.msra.mxu1 %v571_v31 }
   0xf   :  { %556 = vmatprep.subr.mxu1 %v591_v11 }
  0x7b   :  { %v41_v18 = vpop.permute.xlu0 %40 }
  0x7c   :  { %v47_v20 = vsel %vm46_vm2, %v38_v19, %v41_v18 }
  0x7f   :  { %v44_v21 = vpop.permute.xlu0 %43 }
  0x80   :  { %v49_v22 = vsel %vm48_vm3, %v47_v20, %v44_v21 }
  0x81   :  { %525 = vmatmul.mubr.msk.f32.vlgmr.msra.gmra.mrb[0].mxu0 %vm53_vm4, %v49_v22 }
  0x82   :  { %546 = vmatprep.mubr.msk.f32.mxu0 %vm590_vm0, %v591_v11  ;;  %575 = vmatpush3.bf16.msra.mxu0 %v574_v49 }
  0x83   :  { %576 = vmatprep.subr.bf16.mxu0 %v589_v3 }
 0x154   :  { %v123_v34 = vpop.f32.mrb[0].mxu0 }
 0x155   :  { %v131_v35 = vmul.f32 %v492_v32, %v123_v34  ;;  %v526_v36 = vpop.f32.mrb[1].mxu0 }
 0x157   :  { %v136_v37 = vadd.f32 %v493_v33, %v131_v35 }
 0x159   :  { %v137_v38 = vmax.f32 %v136_v37, 0.0 }
 0x15b   :  { %146 = vrot.lane.b32.xlu1 %v137_v38, %s593_s23  ;;  %v142_v39 = vrot.slane %v137_v38, 1  ;;  %v139_v41 = vrot.slane %v137_v38, 7 }
 0x15d   :  { %v145_v40 = vsel %vm144_vm5, %v142_v39, 0.0  ;;  %v141_v43 = vsel %vm37_vm1, 0.0, %v139_v41 }
 0x15f   :  { %150 = vrot.lane.b32.xlu1 %v145_v40, %s594_s12 }
 0x1cd   :  { %v147_v42 = vpop.permute.xlu1 %146 }
 0x1ce   :  { %v153_v44 = vsel %vm48_vm3, %v141_v43, %v147_v42 }
 0x1d1   :  { %v151_v45 = vpop.permute.xlu1 %150 }
 0x1d2   :  { %v155_v46 = vsel %vm154_vm6, %v153_v44, %v151_v45 }
 0x1d3   :  { %540 = vmatmul.mubr.msk.f32.vlgmr.msra.gmra.mrb[0].mxu1 %vm162_vm7, %v155_v46 }
 0x1d4   :  { %558 = vmatprep.mubr.msk.f32.mxu1 %vm590_vm0, %v591_v11  ;;  %557 = vmatpush3.msra.mxu1 %v403_v63 }
 0x1d7   :  { %559 = vmatmul.mubr.msk.f32.vlgmr.msra.gmra.mrb[2].mxu1 %vm46_vm2, %v630_v9 }
 0x2a6   :  { %v232_v50 = vpop.f32.mrb[0].mxu1 }
 0x2a7   :  { %v236_v51 = vsel %vm48_vm3, %v232_v50, 0.0  ;;  %v541_v52 = vpop.f32.mrb[1].mxu1 }
 0x2a8   :  { %v237_v53 = vrot.slane %v236_v51, 4 }
 0x2aa   :  { %v238_v54 = vadd.f32 %v237_v53, %v236_v51  ;;  %v473_v5 = vpop.f32.mrb[2].mxu1 }
 0x2ab   :  { %v560_v6 = vpop.f32.mrb[3].mxu1 }
 0x2ac   :  { %v239_v55 = vrot.slane %v238_v54, 2 }
 0x2ae   :  { %v240_v56 = vadd.f32 %v239_v55, %v238_v54 }
 0x2b0   :  { %v241_v57 = vrot.slane %v240_v56, 1 }
 0x2b2   :  { %v242_v58 = vadd.f32 %v241_v57, %v240_v56 }
 0x2b4   :  { %v244_v59 = vmul.f32 0.125, %v242_v58 }
 0x2b6   :  { %547 = vmatmul.mubr.msk.f32.vlgmr.msra.gmra.mrb[2].mxu0 %vm48_vm3, %v244_v59 }
 0x2b7   :  { %553 = vmatprep.mubr.msk.f32.mxu0 %vm590_vm0, %v591_v11  ;;  %578 = vmatpush3.bf16.msra.mxu0 %v577_v62 }
 0x389   :  { %v316_v1 = vpop.f32.mrb[2].mxu0 }
 0x38a   :  { %v317_v2 = vadd.f32 %v316_v1, %v15_v0  ;;  %v548_v3 = vpop.f32.mrb[3].mxu0 }
 0x38c   :  { %v320_v4 = vmax.f32 %v317_v2, 0.0 }
 0x38e   :  { %554 = vmatmul.mubr.msk.f32.vlgmr.msra.gmra.mrb[4].mxu0 %vm48_vm3, %v320_v4 }
 0x461   :  { %v392_v8 = vpop.f32.mrb[4].mxu0 }
 0x462   :  { %v393_v10 = vadd.f32 %v392_v8, %v16_v7  ;;  %v555_v11 = vpop.f32.mrb[5].mxu0 }
 0x464   :  { %v497_v9 = vmul.f32 -1.442695, %v393_v10 }
 0x466   :  { %585 = vpow2.f32 %v497_v9 }
 0x470   :  { %v586_v12 = vpop.eup %585 }
 0x471   :  { %v399_v13 = vadd.f32 1.0, %v586_v12 }
 0x473   :  { %587 = vrcp.f32 %v399_v13 }
 0x47d   :  { %v588_v17 = vpop.eup %587 }
 0x47e   :  { %v480_v18 = vrot.slane %v588_v17, %v479_v16 }
 0x480   :  { %v481_v19 = vmul.f32 %v480_v18, %v232_v50 }
 0x482   :  { %v482_v20 = vadd.f32 %v481_v19, %v473_v5 }
 0x484   :  { %483 = vst.msk [vmem:[%s714_s2] sm:$0xff] %vm48_vm3, %v482_v20 }

</bundles_post_ra>
